<compile_context>
chip_gen: v6e
topology: v6e:2x2x1
jax: 0.10.0
libtpu: 0.0.40
codegen_flags: <defaults>
</compile_context>

<pallas_src>
import functools

import jax
import jax.numpy as jnp
from jax.experimental import pallas as pl
from jax.experimental.pallas import tpu as pltpu


def _round_up(x: int, m: int) -> int:
    return ((x + m - 1) // m) * m


def _tpu_budget():
    """(tm_max, vmem_limit_bytes) gated on the local TPU generation."""
    try:
        info = pltpu.get_tpu_info()
        vmem = getattr(info, "vmem_capacity_bytes", None)
        if vmem is not None and vmem >= 100 * 1024 * 1024:
            # v5e / v6e: 128 MiB physical VMEM -> amortize each weight pass
            # over 2x tokens.
            return 1024, 96 * 1024 * 1024
    except Exception:
        pass
    # v7x-safe defaults (64 MiB physical VMEM per TensorCore).
    return 512, 48 * 1024 * 1024


def _readout_matmul_kernel(x_ref, w_ref, o_ref, acc_ref, *, tk):
    """One (i, j, k) grid step of y = x @ w_t.

    x_ref: (tm, K)  -- full K panel, resident across j and k for a given i.
    w_ref: (tk, tn) -- weight tile for this (k, j).
    o_ref: (tm, tn) -- output tile, written once at the last k step.
    acc_ref: (tm, tn) f32 scratch accumulator.
    """
    k = pl.program_id(2)
    ks = pl.multiple_of(k * tk, tk)
    part = jnp.dot(
        x_ref[:, pl.ds(ks, tk)], w_ref[...], preferred_element_type=jnp.float32
    )

    @pl.when(k == 0)
    def _():
        acc_ref[...] = part          # write-on-first-k (no zero-init pass)

    @pl.when(k != 0)
    def _():
        acc_ref[...] += part

    @pl.when(k == pl.num_programs(2) - 1)
    def _():
        o_ref[...] = acc_ref[...].astype(o_ref.dtype)


@functools.partial(
    jax.jit,
    static_argnames=("tm", "tn", "tk", "out_n", "out_dtype", "vmem_limit_bytes"),
)
def readout_matmul(x2d, w_t, *, tm, tn, tk, out_n, out_dtype, vmem_limit_bytes):
    """y2d[:M, :out_n] = x2d @ w_t[:, :out_n].

    x2d: [M, K] (K a multiple of tk; M may be ragged w.r.t. tm).
    w_t: [K, N_pad] with N_pad a multiple of tn and columns >= out_n zero.
    """
    M, K = x2d.shape
    K2, Np = w_t.shape
    assert K == K2
    assert K % tk == 0, "reduction axis must be exactly tile-padded (no ragged K reads)"
    assert Np % tn == 0 and out_n <= Np

    grid = (pl.cdiv(M, tm), pl.cdiv(out_n, tn), K // tk)
    kernel = functools.partial(_readout_matmul_kernel, tk=tk)

    return pl.pallas_call(
        kernel,
        out_shape=jax.ShapeDtypeStruct((M, out_n), out_dtype),
        grid_spec=pltpu.PrefetchScalarGridSpec(
            num_scalar_prefetch=0,
            grid=grid,
            in_specs=[
                # x: full K panel, constant block per i -> fetched once per i,
                # NOT re-streamed for every vocab block.
                pl.BlockSpec((tm, K), lambda i, j, k: (i, 0)),
                # weight tile for this (k, j); storage is padded to tn on N,
                # so reads are always in-bounds even for the ragged out block.
                pl.BlockSpec((tk, tn), lambda i, j, k: (k, j)),
            ],
            out_specs=pl.BlockSpec((tm, tn), lambda i, j, k: (i, j)),
            scratch_shapes=[pltpu.VMEM((tm, tn), jnp.float32)],
        ),
        compiler_params=pltpu.CompilerParams(
            dimension_semantics=("parallel", "parallel", "arbitrary"),
            vmem_limit_bytes=vmem_limit_bytes,
        ),
    )(x2d, w_t)


class ReadoutLayer:
    """JAX/Pallas equivalent of labml_nn.neox.model.ReadoutLayer."""

    _TK_MAX = 2048   # hidden (reduction) tile cap; 6144 % 2048 == 0
    _TN_MAX = 2048   # vocab tile cap

    def __init__(self, n_hidden: int = 6144, n_vocab: int = 50432, *, key=None,
                 param_dtype=jnp.bfloat16, out_dtype=jnp.bfloat16):
        if key is None:
            key = jax.random.PRNGKey(0)
        self.n_hidden = n_hidden
        self.n_vocab = n_vocab
        self.out_dtype = out_dtype

        self.tm_max, self.vmem_limit = _tpu_budget()
        self.tk = min(self._TK_MAX, _round_up(n_hidden, 128))
        self.tn = min(self._TN_MAX, _round_up(n_vocab, 128))
        self.k_pad = _round_up(n_hidden, self.tk)
        self.n_pad = _round_up(n_vocab, self.tn)

        # nn.Linear default init: U(-1/sqrt(fan_in), 1/sqrt(fan_in)), weight
        # shape [n_vocab, n_hidden].  Only ONE resident copy is kept: the
        # transposed, zero-padded, bf16 kernel layout [k_pad, n_pad].
        # TODO(synk): fp8 (v7x) / int8 + per-column scales (v5e/v6e) weight path.
        bound = 1.0 / (n_hidden ** 0.5)
        w = jax.random.uniform(
            key, (n_vocab, n_hidden), dtype=jnp.float32, minval=-bound, maxval=bound
        )
        w_t = w.T.astype(param_dtype)
        self.weight_t = jnp.pad(
            w_t, ((0, self.k_pad - n_hidden), (0, self.n_pad - n_vocab))
        )

    def logical_weight_t(self) -> jax.Array:
        """[n_hidden, n_vocab] view of the parameter (for reference checks)."""
        return self.weight_t[: self.n_hidden, : self.n_vocab]

    def __call__(self, x: jax.Array) -> jax.Array:
        """x: [batch, seq, n_hidden] -> [batch, seq, n_vocab]"""
        b, s, h = x.shape
        assert h == self.n_hidden
        M = b * s

        # Token tile: whole M for small inputs; keep the 256-wide MXU full for
        # mid/large M; cap per generation.
        tm = min(self.tm_max, _round_up(M, 8))
        if M > 256:
            tm = min(self.tm_max, _round_up(tm, 256))

        x2d = x.reshape(M, h).astype(self.weight_t.dtype)
        if self.k_pad != h:
            # Reduction axis must be exactly padded (ragged K reads would
            # corrupt the accumulation). Not needed for n_hidden = 6144.
            x2d = jnp.pad(x2d, ((0, 0), (0, self.k_pad - h)))

        y2d = readout_matmul(
            x2d, self.weight_t,
            tm=tm, tn=self.tn, tk=self.tk,
            out_n=self.n_vocab, out_dtype=self.out_dtype,
            vmem_limit_bytes=self.vmem_limit,
        )
        # Output already has logical shape (M, n_vocab): no slice copy needed.
        return y2d.reshape(b, s, self.n_vocab)


if __name__ == "__main__":
    # Small shapes consistent with the module's forward: [batch, seq, n_hidden].
    batch, seq, n_hidden, n_vocab = 2, 8, 128, 256

    key = jax.random.PRNGKey(0)
    kx, kw = jax.random.split(key)

    layer = ReadoutLayer(n_hidden=n_hidden, n_vocab=n_vocab, key=kw)
    x = jax.random.normal(kx, (batch, seq, n_hidden), dtype=jnp.float32)

    y = layer(x)
    y = jax.block_until_ready(y)
    assert y.shape == (batch, seq, n_vocab), y.shape

    # Reference check (same semantics as torch's x @ W.T), computed in f32 from
    # the bf16-stored weight; kernel accumulates f32 and stores bf16, so a
    # bf16-level tolerance is appropriate.
    w_t = layer.logical_weight_t().astype(jnp.float32)
    x_bf = x.astype(jnp.bfloat16).astype(jnp.float32)
    y_ref = jnp.einsum("bsh,hv->bsv", x_bf, w_t,
                       precision=jax.lax.Precision.HIGHEST)
    assert jnp.allclose(y.astype(jnp.float32), y_ref, atol=3e-2, rtol=3e-2)

    print("KERNEL_OK")
</pallas_src>

<mosaic_0001>
module attributes {stable_mosaic.version = 11 : i64} {
  func.func @_readout_matmul_kernel(%arg0: i32, %arg1: i32, %arg2: i32, %arg3: memref<16x128xbf16, #tpu.memory_space<vmem>>, %arg4: memref<128x256xbf16, #tpu.memory_space<vmem>>, %arg5: memref<16x256xbf16, #tpu.memory_space<vmem>>, %arg6: memref<16x256xf32, #tpu.memory_space<vmem>>) attributes {dimension_semantics = [#tpu.dimension_semantics<parallel>, #tpu.dimension_semantics<parallel>, #tpu.dimension_semantics<arbitrary>], iteration_bounds = array<i64: 1, 1, 1>, scalar_prefetch = 0 : i64, scratch_operands = 1 : i64, tpu.core_type = #tpu.core_type<tc>, window_params = [{transform_indices = @transform_0, window_bounds = array<i64: 16, 128>}, {transform_indices = @transform_1, window_bounds = array<i64: 128, 256>}, {transform_indices = @transform_2, window_bounds = array<i64: 16, 256>}]} {
    %c128_i32 = arith.constant 128 : i32
    %0 = arith.muli %arg2, %c128_i32 : i32
    %1 = tpu.assume_multiple %0, 128 : i32
    %c0 = arith.constant 0 : index
    %2 = arith.index_cast %1 : i32 to index
    %3 = vector.load %arg3[%c0, %2] : memref<16x128xbf16, #tpu.memory_space<vmem>>, vector<16x128xbf16>
    %c0_0 = arith.constant 0 : index
    %c0_1 = arith.constant 0 : index
    %4 = vector.load %arg4[%c0_0, %c0_1] : memref<128x256xbf16, #tpu.memory_space<vmem>>, vector<128x256xbf16>
    %cst = arith.constant dense<0.000000e+00> : vector<16x256xf32>
    %5 = tpu.matmul %3, %4, %cst {dimension_numbers = #tpu.dot_dimension_numbers<[1], [0], [0], [1], [0, 0, 1, 1], [], []>} : vector<16x128xbf16>, vector<128x256xbf16>, vector<16x256xf32> -> vector<16x256xf32>
    %c0_i32 = arith.constant 0 : i32
    %6 = arith.cmpi eq, %arg2, %c0_i32 : i32
    %7 = arith.extui %6 : i1 to i32
    %c0_i32_2 = arith.constant 0 : i32
    %8 = arith.cmpi ne, %7, %c0_i32_2 : i32
    scf.if %8 {
      %c0_7 = arith.constant 0 : index
      %c0_8 = arith.constant 0 : index
      %15 = vector.load %arg6[%c0_7, %c0_8] : memref<16x256xf32, #tpu.memory_space<vmem>>, vector<16x256xf32>
      tpu.vector_store %arg6[%c0_7, %c0_8], %5 {strides = array<i32>} : memref<16x256xf32, #tpu.memory_space<vmem>>, vector<16x256xf32>,
    } else {
    }
    %c0_i32_3 = arith.constant 0 : i32
    %9 = arith.cmpi ne, %arg2, %c0_i32_3 : i32
    %10 = arith.extui %9 : i1 to i32
    %c0_i32_4 = arith.constant 0 : i32
    %11 = arith.cmpi ne, %10, %c0_i32_4 : i32
    scf.if %11 {
      %c0_7 = arith.constant 0 : index
      %c0_8 = arith.constant 0 : index
      %15 = vector.load %arg6[%c0_7, %c0_8] : memref<16x256xf32, #tpu.memory_space<vmem>>, vector<16x256xf32>
      %16 = arith.addf %15, %5 : vector<16x256xf32>
      %c0_9 = arith.constant 0 : index
      %c0_10 = arith.constant 0 : index
      %17 = vector.load %arg6[%c0_9, %c0_10] : memref<16x256xf32, #tpu.memory_space<vmem>>, vector<16x256xf32>
      tpu.vector_store %arg6[%c0_9, %c0_10], %16 {strides = array<i32>} : memref<16x256xf32, #tpu.memory_space<vmem>>, vector<16x256xf32>,
    } else {
    }
    %c0_i32_5 = arith.constant 0 : i32
    %12 = arith.cmpi eq, %arg2, %c0_i32_5 : i32
    %13 = arith.extui %12 : i1 to i32
    %c0_i32_6 = arith.constant 0 : i32
    %14 = arith.cmpi ne, %13, %c0_i32_6 : i32
    scf.if %14 {
      %c0_7 = arith.constant 0 : index
      %c0_8 = arith.constant 0 : index
      %15 = vector.load %arg6[%c0_7, %c0_8] : memref<16x256xf32, #tpu.memory_space<vmem>>, vector<16x256xf32>
      %16 = arith.truncf %15 : vector<16x256xf32> to vector<16x256xbf16>
      %c0_9 = arith.constant 0 : index
      %c0_10 = arith.constant 0 : index
      %17 = vector.load %arg5[%c0_9, %c0_10] : memref<16x256xbf16, #tpu.memory_space<vmem>>, vector<16x256xbf16>
      tpu.vector_store %arg5[%c0_9, %c0_10], %16 {strides = array<i32>} : memref<16x256xbf16, #tpu.memory_space<vmem>>, vector<16x256xbf16>,
    } else {
    }
    return
  }
  func.func @transform_0(%arg0: i32, %arg1: i32, %arg2: i32) -> (i32, i32) {
    %c0_i32 = arith.constant 0 : i32
    %c0_i32_0 = arith.constant 0 : i32
    return %arg0, %c0_i32 : i32, i32
  }
  func.func @transform_1(%arg0: i32, %arg1: i32, %arg2: i32) -> (i32, i32) {
    %c0_i32 = arith.constant 0 : i32
    return %arg2, %arg1 : i32, i32
  }
  func.func @transform_2(%arg0: i32, %arg1: i32, %arg2: i32) -> (i32, i32) {
    %c0_i32 = arith.constant 0 : i32
    return %arg0, %arg1 : i32, i32
  }
}

</mosaic_0001>

<bundles_post_ra>
// kernel: readout_matmul.1
= control target key start
LH: loop header
LB: loop body
LE: loop exit
PB: predicated region body
PF: predicated region fallthrough
CT: control target
= control target key end

     0   :  { %7 = vsyncpa [#allocation4], 0  ;;  %s416_s0 = inlined_call_operand.hbm [shape: bf16[16,128], index: 0, kind: input, shape index: {}]   ;;  %s417_s1 = inlined_call_operand.hbm [shape: bf16[128,256], index: 1, kind: input, shape index: {}]   ;;  %s418_s2 = inlined_call_operand.hbm [shape: bf16[16,256], index: 2, kind: output, shape index: {}]  }
   0x1   :  { %8 = vsyncpa [#allocation7], 0 }
   0x2   :  { %9 = vsyncpa [#allocation5], 0  ;;  %s378_s9 = smov [#allocation3]  }
   0x3   :  { %s15_s10 = sshll.u32 %s378_s9, 4  ;;  %s16_s10 = int_to_ptr.vmem [resolvable:$true] %s15_s10 }
   0x4   :  { %s320_s11 = scalar_lea.vmem %s16_s10, 128  ;;  %p325_p1 = scmp.lt.s32.totalorder %s16_s10, %s16_s10 }
   0x5   :  { %p321_p0 = scmp.ne.s32.totalorder %s16_s10, %s320_s11  ;;  %p326_p2 = scmp.lt.s32.totalorder %s320_s11, %s320_s11 }
   0x7   :  { %p327_p3 = por %p326_p2, %p325_p1 }
   0x9   :  { %p328_p4 = pnand %p327_p3, %p321_p0 }
   0xb   :  { %331 = shalt.err (!%p328_p4)
}
   0xc   :  { %s379_s12 = smov 64   ;;  %s380_s13 = smov 4  }
   0xd   :  { %21 = dma.hbm_to_vmem [thread:$0]  %s416_s0, 128, %s16_s10, [#allocation4], %s379_s12, %s379_s12, %s380_s13  }
   0xe   :  { %s381_s16 = smov [#allocation6]  }
   0xf   :  { %s27_s17 = sshll.u32 %s381_s16, 4  ;;  %s28_s17 = int_to_ptr.vmem [resolvable:$true] %s27_s17 }
  0x10   :  { %s340_s18 = scalar_lea.vmem %s28_s17, 2048  ;;  %p345_p6 = scmp.lt.s32.totalorder %s28_s17, %s28_s17 }
  0x11   :  { %p341_p5 = scmp.ne.s32.totalorder %s28_s17, %s340_s18  ;;  %p346_p7 = scmp.lt.s32.totalorder %s340_s18, %s340_s18 }
  0x13   :  { %p347_p8 = por %p346_p7, %p345_p6 }
  0x15   :  { %p348_p9 = pnand %p347_p8, %p341_p5 }
  0x17   :  { %351 = shalt.err (!%p348_p9)
}
  0x18   :  { %s382_s19 = smov 128   ;;  %s383_s20 = smov 8  }
  0x19   :  { %33 = dma.hbm_to_vmem [thread:$0]  %s417_s1, 2048, %s28_s17, [#allocation7], %s382_s19, %s382_s19, %s383_s20  }
  0x1a   :  { %372 = dma.done.wait [#allocation4], 128  }
  0x1b   :  { %373 = vsyncadd [#allocation4], 4294967168 }
  0x1c   :  { %374 = dma.done.wait [#allocation7], 2048  }
  0x1d   :  { %375 = vsyncadd [#allocation7], 4294965248  ;;  %v384_v0 = vmov 0   ;;  %v287_v1 = vld [vmem:[#allocation6 + $0x74] ss:$8 sps:$4 sm:$0xff]   ;;  %s385_s0 = smov [#allocation8]  }
  0x1e   :  { %182 = vmatprep.mubr.bf16.mxu0 %v384_v0  ;;  %v289_v2 = vld [vmem:[#allocation6 + $0x70] ss:$8 sps:$4 sm:$0xff]   ;;  %150 = vmatprep.subr.bf16.mxu0 %v287_v1  ;;  %v290_v3 = vld [vmem:[#allocation6 + $0x64] ss:$8 sps:$4 sm:$0xff]   ;;  %v292_v4 = vld [vmem:[#allocation6 + $0x60] ss:$8 sps:$4 sm:$0xff]  }
  0x1f   :  { %151 = vmatpush1.bf16.msra.mxu0 %v289_v2  ;;  %v293_v5 = vld [vmem:[#allocation6 + $0x54] ss:$8 sps:$4 sm:$0xff]   ;;  %v295_v6 = vld [vmem:[#allocation6 + $0x50] ss:$8 sps:$4 sm:$0xff]   ;;  %v296_v7 = vld [vmem:[#allocation6 + $0x44] ss:$8 sps:$4 sm:$0xff]  }
  0x20   :  { %152 = vmatprep.subr.bf16.mxu0 %v290_v3  ;;  %v298_v8 = vld [vmem:[#allocation6 + $0x40] ss:$8 sps:$4 sm:$0xff]   ;;  %v299_v9 = vld [vmem:[#allocation6 + $0x34] ss:$8 sps:$4 sm:$0xff]   ;;  %v301_v10 = vld [vmem:[#allocation6 + $0x30] ss:$8 sps:$4 sm:$0xff]  }
  0x21   :  { %v302_v11 = vld [vmem:[#allocation6 + $0x24] ss:$8 sps:$4 sm:$0xff]   ;;  %v304_v12 = vld [vmem:[#allocation6 + $0x20] ss:$8 sps:$4 sm:$0xff]   ;;  %v305_v13 = vld [vmem:[#allocation6 + $0x14] ss:$8 sps:$4 sm:$0xff]  }
  0x22   :  { %v307_v14 = vld [vmem:[#allocation6 + $0x10] ss:$8 sps:$4 sm:$0xff]   ;;  %v308_v15 = vld [vmem:[#allocation6 + $0x4] ss:$8 sps:$4 sm:$0xff]   ;;  %v310_v16 = vld [vmem:[#allocation6] ss:$8 sps:$4 sm:$0xff]  }
  0x23   :  { %153 = vmatpush1.bf16.msra.mxu0 %v292_v4  ;;  %v311_v17 = vld [vmem:[#allocation3] sm:$0xff]   ;;  %s243_s1 = sshll.u32 %s385_s0, 4  ;;  %s244_s1 = int_to_ptr.vmem [resolvable:$true] %s243_s1 }
  0x24   :  { %154 = vmatprep.subr.bf16.mxu0 %v293_v5  ;;  %s352_s23 = scalar_lea.vmem %s244_s1, 256  ;;  %p357_p11 = scmp.lt.s32.totalorder %s244_s1, %s244_s1 }
  0x25   :  { %p353_p10 = scmp.ne.s32.totalorder %s244_s1, %s352_s23  ;;  %p358_p12 = scmp.lt.s32.totalorder %s352_s23, %s352_s23 }
  0x27   :  { %155 = vmatpush1.bf16.msra.mxu0 %v295_v6  ;;  %p359_p13 = por %p358_p12, %p357_p11 }
  0x28   :  { %156 = vmatprep.subr.bf16.mxu0 %v296_v7 }
  0x29   :  { %p360_p0 = pnand %p359_p13, %p353_p10 }
  0x2b   :  { %157 = vmatpush1.bf16.msra.mxu0 %v298_v8 }
  0x2c   :  { %158 = vmatprep.subr.bf16.mxu0 %v299_v9 }
  0x2f   :  { %159 = vmatpush1.bf16.msra.mxu0 %v301_v10 }
  0x30   :  { %160 = vmatprep.subr.bf16.mxu0 %v302_v11 }
  0x33   :  { %161 = vmatpush1.bf16.msra.mxu0 %v304_v12 }
  0x34   :  { %162 = vmatprep.subr.bf16.mxu0 %v305_v13 }
  0x37   :  { %163 = vmatpush1.bf16.msra.mxu0 %v307_v14 }
  0x38   :  { %164 = vmatprep.subr.bf16.mxu0 %v308_v15 }
  0x3b   :  { %165 = vmatpush1.bf16.msra.mxu0 %v310_v16 }
  0x3e   :  { %183 = vmatmul.mubr.bf16.vlgmr.msra.gmra.mxu0 %v311_v17 }
  0xfe   :  { %v184_v18 = vpop.f32.mrf.mxu0 }
 0x100   :  { %v186_v19 = vpop.f32.mrf.mxu0 }
 0x101   :  { %v277_v20 = vpack.c.bf16 %v186_v19, %v184_v18 }
 0x102   :  { %v188_v21 = vpop.f32.mrf.mxu0 }
 0x103   :  { %236 = vst [vmem:[#allocation8] sm:$0xff] %v277_v20 }
 0x104   :  { %v190_v22 = vpop.f32.mrf.mxu0 }
 0x105   :  { %v278_v23 = vpack.c.bf16 %v190_v22, %v188_v21 }
 0x107   :  { %237 = vst [vmem:[#allocation8 + $0x8] sm:$0xff] %v278_v23 }
 0x108   :  { %363 = shalt.err (!%p360_p0)
}
 0x109   :  { %249 = dma.vmem_to_hbm [thread:$0]  %s244_s1, 256, %s418_s2, [#allocation5], %s382_s19, %s382_s19, %s383_s20  }
 0x10a   :  { %376 = dma.done.wait [#allocation5], 256  }
 0x10b   :  { %377 = vsyncadd [#allocation5], 4294967040 }
 0x10c   :  { %253 = vsyncpa [#allocation4], 1 }
 0x10d   :  { %254 = vsyncpa [#allocation7], 1 }
 0x10e   :  { %255 = vsyncpa [#allocation5], 1 }

</bundles_post_ra>
